<compile_context>
chip_gen: v6e
topology: v6e:2x2x1
jax: 0.10.0
libtpu: 0.0.40
codegen_flags: <defaults>
</compile_context>

<pallas_src>
import jax
import jax.numpy as jnp
from jax.experimental import pallas as pl
from jax.experimental.pallas import tpu as pltpu

_LANES = 128


def _hinge_kernel(pred_ref, true_ref, out_ref):
    p = pred_ref[...]
    # Cast labels on the VPU (free relative to the HBM streams). Note: if the
    # labels arrive in *higher* precision than y_pred this downcasts them —
    # harmless for +/-1 hinge labels.
    t = true_ref[...].astype(p.dtype)
    # Weakly-typed literals keep bf16 inputs in bf16, f32 in f32.
    out_ref[...] = jnp.maximum(1.0 - p * t, 0.0)


def _block_budget():
    """(target_block_bytes_per_operand, vmem_limit_bytes), generation-aware."""
    vmem_cap = 128 << 20
    try:
        info = pltpu.get_tpu_info()
        vmem_cap = int(getattr(info, "vmem_capacity_bytes", vmem_cap))
    except Exception:
        pass
    if vmem_cap <= (64 << 20):
        # v7x-like: 64 MiB physical VMEM.  4 MiB blocks -> 3 ops x 2 bufs =
        # 24 MiB; cap the scoped limit well under physical.
        return 4 << 20, 40 << 20
    # v5e / v6e: 128 MiB physical VMEM.  v5e's scoped default is only 16 MiB,
    # so raise it explicitly to keep double-buffered 4 MiB blocks.
    return 4 << 20, 48 << 20


def _sublane(dtype):
    return max(8, 32 // jnp.dtype(dtype).itemsize)


def hinge_loss(y_pred, y_true, *, lane_width=1024, min_pallas_elems=1 << 16):
    assert y_pred.shape == y_true.shape, "y_pred and y_true must match shape"
    orig_shape = y_pred.shape
    out_dtype = y_pred.dtype
    n = int(y_pred.size)

    # Small-input fast path: XLA's fused elementwise beats kernel launch +
    # layout plumbing for tiny tensors.
    if n < min_pallas_elems:
        t = y_true.astype(out_dtype)
        return jnp.maximum(1.0 - y_pred * t, 0.0).astype(out_dtype)

    itemsize = jnp.dtype(out_dtype).itemsize
    # Sublane granule covering both operand dtypes (8 rows for 32-bit,
    # 16 for 16-bit, 32 for 8-bit/bool).
    sub = max(_sublane(out_dtype), _sublane(y_true.dtype))

    # Pick the widest lane-dense width that divides n exactly (no pad/slice).
    W = None
    for cand in (8 * _LANES, 4 * _LANES, 2 * _LANES, _LANES):
        if cand <= max(lane_width, _LANES) and n % cand == 0:
            W = cand
            break
    aligned = W is not None
    if not aligned:
        W = max(_LANES, (lane_width // _LANES) * _LANES)

    if aligned:
        rows = n // W
        p2d = y_pred.reshape(rows, W)
        t2d = y_true.reshape(rows, W)
    else:
        # Bounded pad: at most W*sub - 1 elements (a few KiB), never a full
        # multi-MiB block.  Padded tail is sliced off afterwards.
        granule = W * sub
        n_pad = pl.cdiv(n, granule) * granule
        rows = n_pad // W
        p2d = jnp.pad(y_pred.reshape(-1), (0, n_pad - n)).reshape(rows, W)
        t2d = jnp.pad(y_true.reshape(-1), (0, n_pad - n)).reshape(rows, W)

    target_block_bytes, vmem_limit = _block_budget()

    if rows <= sub:
        # Single full-array block (block dim == array dim is always legal).
        block_rows = rows
    else:
        block_rows = max(sub, (target_block_bytes // (W * itemsize)) // sub * sub)
        if rows >= 2 * sub:
            # Keep grid >= 2 whenever possible so v7x can shard the parallel
            # axis across both TensorCores.
            cap = max(sub, (rows // 2) // sub * sub)
            block_rows = min(block_rows, cap)
        block_rows = min(block_rows, (rows // sub) * sub)
    grid = (pl.cdiv(rows, block_rows),)

    out2d = pl.pallas_call(
        _hinge_kernel,
        out_shape=jax.ShapeDtypeStruct((rows, W), out_dtype),
        grid_spec=pltpu.PrefetchScalarGridSpec(
            num_scalar_prefetch=0,
            grid=grid,
            in_specs=[
                # Full-width blocks: each DMA is one contiguous HBM stretch,
                # every store an unmasked lane-dense vst.  Ragged last row-
                # block (if any) is masked by Pallas.
                pl.BlockSpec((block_rows, W), lambda i: (i, 0)),
                pl.BlockSpec((block_rows, W), lambda i: (i, 0)),
            ],
            out_specs=pl.BlockSpec((block_rows, W), lambda i: (i, 0)),
        ),
        compiler_params=pltpu.CompilerParams(
            dimension_semantics=("parallel",),
            vmem_limit_bytes=vmem_limit,
        ),
    )(p2d, t2d)

    if aligned:
        return out2d.reshape(orig_shape)
    return out2d.reshape(-1)[:n].reshape(orig_shape)


def _reference(y_pred, y_true):
    return jnp.maximum(1.0 - y_pred * y_true.astype(y_pred.dtype), 0.0)


if __name__ == "__main__":
    key = jax.random.PRNGKey(0)
    keys = jax.random.split(key, 10)

    def make_case(kp, kt, shape, label_dtype=jnp.float32):
        y_pred = jax.random.normal(kp, shape, dtype=jnp.float32)
        y_true = jnp.where(jax.random.bernoulli(kt, 0.5, shape), 1, -1).astype(
            label_dtype
        )
        return y_pred, y_true

    cases = [
        # (shape, label dtype) — all small; force the Pallas path below.
        ((2, 4, 16, 16), jnp.float32),   # aligned, single full-array block
        ((64, 128), jnp.float32),        # aligned, grid = 1
        ((5, 4, 32, 32), jnp.float32),   # aligned, ragged masked last block
        ((7, 11, 13), jnp.float32),      # non-128-divisible -> bounded pad path
        ((4, 8, 32, 32), jnp.int8),      # mixed dtype: int8 labels cast in-kernel
    ]

    for idx, (shape, ldt) in enumerate(cases):
        y_pred, y_true = make_case(keys[2 * idx], keys[2 * idx + 1], shape, ldt)
        out = jax.block_until_ready(hinge_loss(y_pred, y_true, min_pallas_elems=0))
        ref = _reference(y_pred, y_true)
        assert out.shape == shape and out.dtype == y_pred.dtype
        assert jnp.allclose(out, ref, atol=1e-6, rtol=1e-6), f"mismatch in case {idx}"

    print("KERNEL_OK")
</pallas_src>

<mosaic_0001>
module attributes {stable_mosaic.version = 11 : i64} {
  func.func @_hinge_kernel(%arg0: i32, %arg1: memref<2x1024xf32, #tpu.memory_space<vmem>>, %arg2: memref<2x1024xf32, #tpu.memory_space<vmem>>, %arg3: memref<2x1024xf32, #tpu.memory_space<vmem>>) attributes {dimension_semantics = [#tpu.dimension_semantics<parallel>], iteration_bounds = array<i64: 1>, scalar_prefetch = 0 : i64, scratch_operands = 0 : i64, tpu.core_type = #tpu.core_type<tc>, window_params = [{transform_indices = @transform_0, window_bounds = array<i64: 2, 1024>}, {transform_indices = @transform_1, window_bounds = array<i64: 2, 1024>}, {transform_indices = @transform_2, window_bounds = array<i64: 2, 1024>}]} {
    %c0 = arith.constant 0 : index
    %c0_0 = arith.constant 0 : index
    %0 = vector.load %arg1[%c0, %c0_0] : memref<2x1024xf32, #tpu.memory_space<vmem>>, vector<2x1024xf32>
    %c0_1 = arith.constant 0 : index
    %c0_2 = arith.constant 0 : index
    %1 = vector.load %arg2[%c0_1, %c0_2] : memref<2x1024xf32, #tpu.memory_space<vmem>>, vector<2x1024xf32>
    %2 = arith.mulf %0, %1 : vector<2x1024xf32>
    %cst = arith.constant 1.000000e+00 : f32
    %3 = vector.broadcast %cst : f32 to vector<2x1024xf32>
    %4 = arith.subf %3, %2 : vector<2x1024xf32>
    %cst_3 = arith.constant 0.000000e+00 : f32
    %5 = vector.broadcast %cst_3 : f32 to vector<2x1024xf32>
    %6 = arith.maximumf %4, %5 : vector<2x1024xf32>
    %c0_4 = arith.constant 0 : index
    %c0_5 = arith.constant 0 : index
    %7 = vector.load %arg3[%c0_4, %c0_5] : memref<2x1024xf32, #tpu.memory_space<vmem>>, vector<2x1024xf32>
    tpu.vector_store %arg3[%c0_4, %c0_5], %6 {strides = array<i32>} : memref<2x1024xf32, #tpu.memory_space<vmem>>, vector<2x1024xf32>,
    return
  }
  func.func @transform_0(%arg0: i32) -> (i32, i32) {
    %c0_i32 = arith.constant 0 : i32
    %c0_i32_0 = arith.constant 0 : i32
    return %arg0, %c0_i32 : i32, i32
  }
  func.func @transform_1(%arg0: i32) -> (i32, i32) {
    %c0_i32 = arith.constant 0 : i32
    %c0_i32_0 = arith.constant 0 : i32
    return %arg0, %c0_i32 : i32, i32
  }
  func.func @transform_2(%arg0: i32) -> (i32, i32) {
    %c0_i32 = arith.constant 0 : i32
    %c0_i32_0 = arith.constant 0 : i32
    return %arg0, %c0_i32 : i32, i32
  }
}

</mosaic_0001>

<bundles_post_ra>
// kernel: tpu_custom_call.1
= control target key start
LH: loop header
LB: loop body
LE: loop exit
PB: predicated region body
PF: predicated region fallthrough
CT: control target
= control target key end

     0   :  { %7 = vsyncpa [#allocation3], 0  ;;  %s160_s0 = inlined_call_operand.hbm [shape: f32[2,1024], index: 0, kind: input, shape index: {}]   ;;  %s161_s1 = inlined_call_operand.hbm [shape: f32[2,1024], index: 1, kind: input, shape index: {}]   ;;  %s162_s2 = inlined_call_operand.hbm [shape: f32[2,1024], index: 2, kind: output, shape index: {}]  }
   0x1   :  { %8 = vsyncpa [#allocation6], 0 }
   0x2   :  { %9 = vsyncpa [#allocation4], 0  ;;  %s133_s9 = smov [#allocation2]   ;;  %s134_s11 = smov [#allocation5]  }
   0x3   :  { %s16_s10 = sshll.u32 %s133_s9, 4  ;;  %s26_s12 = sshll.u32 %s134_s11, 4  ;;  %s17_s10 = int_to_ptr.vmem [resolvable:$true] %s16_s10  ;;  %s27_s12 = int_to_ptr.vmem [resolvable:$true] %s26_s12 }
   0x4   :  { %s75_s13 = scalar_lea.vmem %s17_s10, 256  ;;  %p80_p1 = scmp.lt.s32.totalorder %s17_s10, %s17_s10 }
   0x5   :  { %p76_p0 = scmp.ne.s32.totalorder %s17_s10, %s75_s13  ;;  %p81_p2 = scmp.lt.s32.totalorder %s75_s13, %s75_s13 }
   0x7   :  { %p82_p3 = por %p81_p2, %p80_p1 }
   0x9   :  { %p83_p4 = pnand %p82_p3, %p76_p0 }
   0xb   :  { %86 = shalt.err (!%p83_p4)
}
   0xc   :  { %19 = dma.hbm_to_vmem [thread:$0]  %s160_s0, 256, %s17_s10, [#allocation3]  }
   0xd   :  { %s95_s16 = scalar_lea.vmem %s27_s12, 256  ;;  %p100_p6 = scmp.lt.s32.totalorder %s27_s12, %s27_s12 }
   0xe   :  { %p96_p5 = scmp.ne.s32.totalorder %s27_s12, %s95_s16  ;;  %p101_p7 = scmp.lt.s32.totalorder %s95_s16, %s95_s16 }
  0x10   :  { %p102_p8 = por %p101_p7, %p100_p6 }
  0x12   :  { %p103_p9 = pnand %p102_p8, %p96_p5 }
  0x14   :  { %106 = shalt.err (!%p103_p9)
}
  0x15   :  { %29 = dma.hbm_to_vmem [thread:$0]  %s161_s1, 256, %s27_s12, [#allocation6]  }
  0x16   :  { %127 = dma.done.wait [#allocation3], 256  }
  0x17   :  { %128 = vsyncadd [#allocation3], 4294967040 }
  0x18   :  { %129 = dma.done.wait [#allocation6], 256  }
  0x19   :  { %130 = vsyncadd [#allocation6], 4294967040  ;;  %v36_v0 = vld [vmem:[#allocation2] sm:$0xff]  ;;  %v38_v1 = vld [vmem:[#allocation5] sm:$0xff]  ;;  %s135_s0 = smov [#allocation7]  }
  0x1a   :  { %v37_v2 = vld [vmem:[#allocation2 + $0x8] sm:$0xff]  ;;  %v40_v3 = vmul.f32 %v38_v1, %v36_v0  ;;  %v39_v4 = vld [vmem:[#allocation5 + $0x8] sm:$0xff]  ;;  %s54_s19 = sshll.u32 %s135_s0, 4  ;;  %s55_s19 = int_to_ptr.vmem [resolvable:$true] %s54_s19 }
  0x1b   :  { %v41_v5 = vmul.f32 %v39_v4, %v37_v2  ;;  %s107_s1 = scalar_lea.vmem %s55_s19, 256  ;;  %p112_p11 = scmp.lt.s32.totalorder %s55_s19, %s55_s19 }
  0x1c   :  { %v42_v6 = vsub.f32 1.0, %v40_v3  ;;  %p108_p10 = scmp.ne.s32.totalorder %s55_s19, %s107_s1  ;;  %p113_p12 = scmp.lt.s32.totalorder %s107_s1, %s107_s1 }
  0x1d   :  { %v43_v7 = vsub.f32 1.0, %v41_v5 }
  0x1e   :  { %v44_v8 = vmax.f32 %v42_v6, 0.0  ;;  %p114_p13 = por %p113_p12, %p112_p11 }
  0x1f   :  { %v45_v9 = vmax.f32 %v43_v7, 0.0 }
  0x20   :  { %46 = vst [vmem:[#allocation7] sm:$0xff] %v44_v8  ;;  %p115_p0 = pnand %p114_p13, %p108_p10 }
  0x21   :  { %47 = vst [vmem:[#allocation7 + $0x8] sm:$0xff] %v45_v9 }
  0x22   :  { %118 = shalt.err (!%p115_p0)
}
  0x23   :  { %57 = dma.vmem_to_hbm [thread:$0]  %s55_s19, 256, %s162_s2, [#allocation4]  }
  0x24   :  { %131 = dma.done.wait [#allocation4], 256  }
  0x25   :  { %132 = vsyncadd [#allocation4], 4294967040 }
  0x26   :  { %61 = vsyncpa [#allocation3], 1 }
  0x27   :  { %62 = vsyncpa [#allocation6], 1 }
  0x28   :  { %63 = vsyncpa [#allocation4], 1 }

</bundles_post_ra>
